<compile_context>
chip_gen: v5e
topology: v5e:2x2
jax: 0.10.0
libtpu: 0.0.40
codegen_flags: <defaults>
</compile_context>

<pallas_src>
import jax
import jax.numpy as jnp
from jax.experimental import pallas as pl
from jax.experimental.pallas import tpu as pltpu


def _pick_num_chunks(N, total_bytes,
                     chunk_target_bytes=16 * 1024 * 1024, max_chunks=8):
    """A handful of large DMAs: ~16 MiB each, capped at 8 in flight (and at
    one chunk per row).  A single DMA for small arrays."""
    if N <= 1 or total_bytes <= chunk_target_bytes:
        return 1
    return int(min(max_chunks, N, pl.cdiv(total_bytes, chunk_target_bytes)))


def _make_hbm_copy_kernel(N, n_chunks):
    """Build a kernel that copies an (N, F) HBM buffer to another HBM buffer
    with `n_chunks` row-chunked async DMAs (all issued, then all awaited)."""
    chunk_rows = pl.cdiv(N, n_chunks)
    plan = []  # (sem_index, row_start, row_count) — all static Python ints
    for c in range(n_chunks):
        start = c * chunk_rows
        size = min(chunk_rows, N - start)
        if size > 0:
            plan.append((len(plan), start, size))

    def kernel(x_hbm, o_hbm, sems):
        copies = [
            pltpu.make_async_copy(
                x_hbm.at[pl.ds(start, size), :],
                o_hbm.at[pl.ds(start, size), :],
                sems.at[s],
            )
            for (s, start, size) in plan
        ]
        for cp in copies:   # issue all DMAs (they overlap on the DMA engines)
            cp.start()
        for cp in copies:   # then drain
            cp.wait()

    return kernel, len(plan)


def unflatten(x, C=128, H=7, W=7, *, materialize=False):
    """Pallas equivalent of Unflatten.forward: (N, C*H*W) -> (N, C, H, W).

    Default (`materialize=False`): metadata-only reshape — identical semantics
    to torch.Tensor.view on a contiguous tensor, zero HBM traffic.

    `materialize=True`: produce a fresh HBM buffer via a Pallas kernel doing
    direct HBM->HBM DMA (no VMEM staging), e.g. to act as a layout anchor.
    """
    N, F = x.shape
    assert F == C * H * W, f"expected last dim {C * H * W}, got {F}"

    if not materialize:
        # TODO(synk): pure view/reshape has no compute; stays as JAX metadata.
        return x.reshape(N, C, H, W)

    itemsize = jnp.dtype(x.dtype).itemsize
    total_bytes = N * F * itemsize
    n_chunks = _pick_num_chunks(N, total_bytes)
    kernel, n_dmas = _make_hbm_copy_kernel(N, n_chunks)

    flat_out = pl.pallas_call(
        kernel,
        out_shape=jax.ShapeDtypeStruct((N, F), x.dtype),
        # Both operands stay in HBM; the kernel moves bytes with explicit DMA.
        in_specs=[pl.BlockSpec(memory_space=pl.ANY)],
        out_specs=pl.BlockSpec(memory_space=pl.ANY),
        scratch_shapes=[pltpu.SemaphoreType.DMA((n_dmas,))],
        # Pure memory traffic: zero flops, 1 read + 1 write of the tensor.
        cost_estimate=pl.CostEstimate(
            flops=0,
            transcendentals=0,
            bytes_accessed=2 * total_bytes,
        ),
        compiler_params=pltpu.CompilerParams(has_side_effects=True),
    )(x)

    # The final (N, F) -> (N, C, H, W) step is metadata-only.
    return flat_out.reshape(N, C, H, W)


if __name__ == "__main__":
    # Small shapes consistent with the module: N=2, C=4, H=8, W=16 -> F=512.
    N, C, H, W = 2, 4, 8, 16
    key = jax.random.PRNGKey(0)
    x = jax.random.normal(key, (N, C * H * W), dtype=jnp.float32)

    ref = x.reshape(N, C, H, W)

    # Default (recommended) path: metadata-only reshape.
    y_meta = unflatten(x, C=C, H=H, W=W)
    # Explicit materializing Pallas kernel path (HBM->HBM DMA copy).
    y_copy = unflatten(x, C=C, H=H, W=W, materialize=True)

    y_meta, y_copy = jax.block_until_ready((y_meta, y_copy))

    assert y_meta.shape == (N, C, H, W) and y_meta.dtype == x.dtype
    assert y_copy.shape == (N, C, H, W) and y_copy.dtype == x.dtype
    assert jnp.array_equal(y_meta, ref)
    assert jnp.array_equal(y_copy, ref)

    print("KERNEL_OK")
</pallas_src>

<mosaic_0001>
module attributes {stable_mosaic.version = 11 : i64} {
  func.func @kernel(%arg0: memref<2x512xf32, #tpu.memory_space<any>>, %arg1: memref<2x512xf32, #tpu.memory_space<any>>, %arg2: memref<1x!tpu.dma_semaphore, #tpu.memory_space<semaphore_mem>>) attributes {dimension_semantics = [], scalar_prefetch = 0 : i64, scratch_operands = 1 : i64, tpu.core_type = #tpu.core_type<tc>} {
    %c0_i32 = arith.constant 0 : i32
    %c0_i32_0 = arith.constant 0 : i32
    %c0_i32_1 = arith.constant 0 : i32
    %0 = tpu.memref_slice %arg0[%c0_i32_0, %c0_i32_1] : memref<2x512xf32, #tpu.memory_space<any>> -> memref<2x512xf32, #tpu.memory_space<any>>
    %c0_i32_2 = arith.constant 0 : i32
    %c0_i32_3 = arith.constant 0 : i32
    %1 = tpu.memref_slice %arg1[%c0_i32_2, %c0_i32_3] : memref<2x512xf32, #tpu.memory_space<any>> -> memref<2x512xf32, #tpu.memory_space<any>>
    %2 = tpu.memref_slice %arg2[%c0_i32] : memref<1x!tpu.dma_semaphore, #tpu.memory_space<semaphore_mem>> -> memref<1x!tpu.dma_semaphore, #tpu.memory_space<semaphore_mem>>
    %3 = tpu.memref_squeeze %2 : memref<1x!tpu.dma_semaphore, #tpu.memory_space<semaphore_mem>> -> memref<!tpu.dma_semaphore, #tpu.memory_space<semaphore_mem>>
    tpu.enqueue_dma source(%0 : memref<2x512xf32, #tpu.memory_space<any>>) target(%1 : memref<2x512xf32, #tpu.memory_space<any>>) target_semaphore(%3 : memref<!tpu.dma_semaphore, #tpu.memory_space<semaphore_mem>>)
    %c0_i32_4 = arith.constant 0 : i32
    %c0_i32_5 = arith.constant 0 : i32
    %c0_i32_6 = arith.constant 0 : i32
    %4 = tpu.memref_slice %arg0[%c0_i32_5, %c0_i32_6] : memref<2x512xf32, #tpu.memory_space<any>> -> memref<2x512xf32, #tpu.memory_space<any>>
    %c0_i32_7 = arith.constant 0 : i32
    %c0_i32_8 = arith.constant 0 : i32
    %5 = tpu.memref_slice %arg1[%c0_i32_7, %c0_i32_8] : memref<2x512xf32, #tpu.memory_space<any>> -> memref<2x512xf32, #tpu.memory_space<any>>
    %6 = tpu.memref_slice %arg2[%c0_i32_4] : memref<1x!tpu.dma_semaphore, #tpu.memory_space<semaphore_mem>> -> memref<1x!tpu.dma_semaphore, #tpu.memory_space<semaphore_mem>>
    %7 = tpu.memref_squeeze %6 : memref<1x!tpu.dma_semaphore, #tpu.memory_space<semaphore_mem>> -> memref<!tpu.dma_semaphore, #tpu.memory_space<semaphore_mem>>
    tpu.wait_dma2 semaphore(%7 : memref<!tpu.dma_semaphore, #tpu.memory_space<semaphore_mem>>) src(%4 : memref<2x512xf32, #tpu.memory_space<any>>) dst(%5 : memref<2x512xf32, #tpu.memory_space<any>>)
    return
  }
}

</mosaic_0001>

<bundles_post_ra>
// kernel: tpu_custom_call.1
= control target key start
LH: loop header
LB: loop body
LE: loop exit
PB: predicated region body
PF: predicated region fallthrough
CT: control target
= control target key end

     0   :  { %s33_s12 = smov [#allocation2]   ;;  %s34_s13 = smov [#allocation3]   ;;  %s52_s0 = inlined_call_operand.hbm [shape: f32[2,512], index: 0, kind: input, shape index: {}]   ;;  %s53_s1 = inlined_call_operand.hbm [shape: f32[2,512], index: 1, kind: output, shape index: {}]  }
   0x1   :  { %s10_s8 = sshll.u32 %s52_s0, 4  ;;  %s12_s11 = sshll.u32 %s53_s1, 4  ;;  %s11_s8 = int_to_ptr.hbm [resolvable:$true] %s10_s8  ;;  %s13_s11 = int_to_ptr.hbm [resolvable:$true] %s12_s11 }
   0x2   :  { %s35_s14 = smov 0  }
   0x3   :  { %16 = dma.general %s11_s8, 128, %s13_s11, %s33_s12, %s34_s13, [#allocation4], %s35_s14, 0  }
   0x4   :  { %31 = dma.done.wait [#allocation2], 128 }
   0x5   :  { %32 = vsyncadd [#allocation2], 4294967168 }
   0x6   :  { %21 = vsyncmov [#allocation2] }
   0x9   :  { %s22_s15 = vpop.sfrf %21 }
   0xa   :  { %p27_p0 = scmp.ne.s32.totalorder %s22_s15, 0 }
   0xc   :  { %26 = shalt.err (%p27_p0)  }

</bundles_post_ra>
